<compile_context>
chip_gen: v6e
topology: v6e:2x2x1
jax: 0.10.0
libtpu: 0.0.40
codegen_flags: <defaults>
</compile_context>

<pallas_src>
import functools

import jax
import jax.numpy as jnp
from jax import lax
from jax.experimental import pallas as pl
from jax.experimental.pallas import tpu as pltpu

_MIB = 1024 * 1024


def _cdiv(a, b):
    return -(-a // b)


def _round_up(x, m):
    return _cdiv(x, m) * m


def _vmem_capacity_bytes():
    """Physical VMEM per TensorCore; conservative (v7x, 64 MiB) fallback."""
    try:
        info = pltpu.get_tpu_info()
        for attr in ("vmem_capacity_bytes", "vmem_bytes", "vmem_size_bytes"):
            v = getattr(info, attr, None)
            if v:
                return int(v)
    except Exception:
        pass
    return 64 * _MIB


def _choose_hidden_tile(C, H2, tn, vmem_cap):
    """Return (tn_eff, H2_padded).

    Weights become VMEM-resident (tn_eff == H2, hidden grid axis of size 1,
    constant weight index_maps -> DMA'd exactly once) whenever the bf16
    W1_out + W1_gate + W2 fit ~30% of physical VMEM (leaves headroom for the
    double-buffered copies Pallas may allocate plus activations/intermediates:
    ~19 MiB raw on 64 MiB parts, ~38 MiB on 128 MiB parts).  Otherwise the
    hidden dim is streamed in `tn`-wide blocks (multiple of 128, default 256).
    """
    if tn is None:
        budget = int(0.30 * vmem_cap)
        if 3 * C * H2 * 2 <= budget:
            return H2, H2
        tn = 256
    tn = int(tn)
    if tn >= H2:
        return H2, H2
    assert tn % 128 == 0, "streamed hidden tile must be a multiple of 128"
    return tn, _round_up(H2, tn)


def _choose_token_tile(L, target):
    """Lane tile over the sequence dim L.

    Whole-L tiles (always a legal block shape) avoid any padding; otherwise a
    balanced multiple-of-128 tile so the last tile is not mostly zero columns.
    """
    if L <= target:
        return L
    n = _cdiv(L, target)
    return _round_up(_cdiv(L, n), 128)


def _ffn_swiglu_ncl_kernel(x_ref, gamma_ref, beta_ref, w1o_ref, w1g_ref, w2_ref,
                           o_ref, y_ref, acc_ref, *, bf16_gate):
    """One (batch b, token-tile i, hidden-block j) grid step, NCL layout.

    x_ref      : (C, tl)  f32   token tile (resident across j)
    gamma/beta : (C, 1)   f32
    w1o_ref    : (tn, C)  bf16  block of W1[:H2]   ("out" half)
    w1g_ref    : (tn, C)  bf16  block of W1[H2:]   ("gate" half)
    w2_ref     : (C, tn)  bf16  block of W2
    o_ref      : (C, tl)        output tile (revisited across j)
    y_ref      : (C, tl)  bf16  scratch: LayerNorm output (computed at j==0)
    acc_ref    : (C, tl)  f32   scratch: output accumulator over hidden blocks
    """
    j = pl.program_id(2)

    # LayerNorm over the embedding dim C (sublane axis -> XLU reduce), hoisted
    # out of the hidden-block loop: computed once per token tile.
    @pl.when(j == 0)
    def _():
        x = x_ref[...].astype(jnp.float32)                      # (C, tl)
        mean = jnp.mean(x, axis=0, keepdims=True)               # (1, tl)
        xc = x - mean
        var = jnp.mean(xc * xc, axis=0, keepdims=True)
        y = xc * lax.rsqrt(var + 1e-6) * gamma_ref[...] + beta_ref[...]
        y_ref[...] = y.astype(y_ref.dtype)
        acc_ref[...] = jnp.zeros_like(acc_ref)

    y = y_ref[...]                                              # (C, tl) bf16

    # First linear as two half-width matmuls (bf16 in, f32 accumulate): no
    # (H, tl) intermediate to slice.
    h_out = jnp.dot(w1o_ref[...], y, preferred_element_type=jnp.float32)   # (tn, tl)
    h_gate = jnp.dot(w1g_ref[...], y, preferred_element_type=jnp.float32)  # (tn, tl)

    # SwiGLU gating; sigmoid's exp runs on the EUP slot (free under MXU slack).
    if bf16_gate:
        # Optional bf16 VPU/EUP gating for small-C configs on v6e/v7x;
        # keep False on v5e (no bf16 VPU/EUP).
        g = h_gate.astype(jnp.bfloat16)
        z = h_out.astype(jnp.bfloat16) * (g * jax.nn.sigmoid(g))
    else:
        z = (h_out * (h_gate * jax.nn.sigmoid(h_gate))).astype(jnp.bfloat16)

    # Second linear, accumulated over hidden blocks.
    acc_ref[...] += jnp.dot(w2_ref[...], z, preferred_element_type=jnp.float32)

    @pl.when(j == pl.num_programs(2) - 1)
    def _():
        o_ref[...] = acc_ref[...].astype(o_ref.dtype)


def pack_ffn_swiglu_params(gamma, beta, w1, w2, tn=None):
    """One-time weight packing (hoisted out of the per-call jitted forward).

    w1: (H, C) = linear1.weight, w2: (C, H//2) = linear2.weight (no bias).
    Returns ((C,1) f32 gamma, (C,1) f32 beta, bf16 W1_out, bf16 W1_gate,
    bf16 W2), with the hidden dim zero-padded to the streaming tile if needed
    (padded hidden rows/cols contribute exactly zero to the output).
    """
    H, C = w1.shape
    H2 = w2.shape[1]
    assert H == 2 * H2, "w1 hidden dim must be twice w2 input dim"
    _, H2p = _choose_hidden_tile(C, H2, tn, _vmem_capacity_bytes())
    pad = H2p - H2
    w1o, w1g, w2p = w1[:H2], w1[H2:], w2
    if pad:
        w1o = jnp.pad(w1o, ((0, pad), (0, 0)))
        w1g = jnp.pad(w1g, ((0, pad), (0, 0)))
        w2p = jnp.pad(w2p, ((0, 0), (0, pad)))
    gamma2 = jnp.asarray(gamma, jnp.float32).reshape(C, 1)
    beta2 = jnp.asarray(beta, jnp.float32).reshape(C, 1)
    return (gamma2, beta2, w1o.astype(jnp.bfloat16), w1g.astype(jnp.bfloat16),
            w2p.astype(jnp.bfloat16))


@functools.partial(jax.jit, static_argnames=("tm", "tn", "bf16_gate"))
def feedforward_swiglu_packed(x_ncl, gamma2, beta2, w1o, w1g, w2p,
                              tm=None, tn=None, bf16_gate=False):
    """x_ncl: (B, C, L) f32.  Packed params from pack_ffn_swiglu_params (same
    `tn`).  Returns (B, C, L).  NOTE: bf16 MXU operands (intentional precision
    contract vs. the f32 PyTorch module); Dropout(rate=0.0) is the identity.
    """
    B, C, L = x_ncl.shape
    H2p = w1o.shape[0]
    assert w1g.shape == (H2p, C) and w2p.shape == (C, H2p)

    cap = _vmem_capacity_bytes()
    tn_eff, H2p_chk = _choose_hidden_tile(C, H2p, tn, cap)
    assert H2p_chk == H2p and H2p % tn_eff == 0, \
        "packed weights were built with a different `tn`"
    resident = tn_eff == H2p

    # Token (lane) tile over L: larger when weights are streamed so that
    # arithmetic intensity (~tl flops per weight byte) stays above the HBM
    # roofline on v5e/v6e.
    tl = _choose_token_tile(L, tm if tm is not None else (512 if resident else 768))

    def vmem_need(tl_):
        act = C * tl_ * (2 * 4 + 2 * 4 + 2 + 4)       # x(dbl)+out(dbl)+y+acc
        inter = tn_eff * tl_ * (3 * 4 + 2)            # h_out, h_gate, z f32 + z bf16
        wts = 2 * 3 * C * tn_eff * 2                  # weight blocks (assume dbl-buf)
        gb = 2 * _round_up(C, 8) * 128 * 4            # (C,1) gamma/beta, lane-padded
        return act + inter + wts + gb

    # Auto-shrink the token tile if the estimate would not fit (v7x: 64 MiB).
    while vmem_need(tl) > int(0.70 * cap) and tl >= 256 and tl % 256 == 0:
        tl //= 2

    Lp = _round_up(L, tl)
    x = x_ncl if Lp == L else jnp.pad(x_ncl, ((0, 0), (0, 0), (0, Lp - L)))
    num_l, num_h = Lp // tl, H2p // tn_eff
    grid = (B, num_l, num_h)

    need = vmem_need(tl)
    vmem_limit = int(min(max(int(need * 1.5), 32 * _MIB), int(0.85 * cap)))

    # HBM traffic: activations once; weights once when resident, else
    # re-streamed for every (batch, token-tile).
    w_bytes = 3 * C * H2p * 2
    w_traffic = w_bytes if resident else B * num_l * w_bytes
    cost = pl.CostEstimate(
        flops=6 * B * Lp * C * H2p,
        transcendentals=B * Lp * H2p,
        bytes_accessed=2 * B * C * Lp * 4 + w_traffic,
    )

    kernel = functools.partial(_ffn_swiglu_ncl_kernel, bf16_gate=bf16_gate)

    # TODO(synk): if profiling a streamed-weight config still shows exposed
    # weight DMA, add pipeline_mode=pl.Buffered(3) to the three weight specs.
    out = pl.pallas_call(
        kernel,
        out_shape=jax.ShapeDtypeStruct((B, C, Lp), x_ncl.dtype),
        grid_spec=pltpu.PrefetchScalarGridSpec(
            num_scalar_prefetch=0,
            grid=grid,
            in_specs=[
                pl.BlockSpec((None, C, tl), lambda b, i, j: (b, 0, i)),   # x tile
                pl.BlockSpec((C, 1), lambda b, i, j: (0, 0)),             # gamma
                pl.BlockSpec((C, 1), lambda b, i, j: (0, 0)),             # beta
                pl.BlockSpec((tn_eff, C), lambda b, i, j: (j, 0)),        # W1 out half
                pl.BlockSpec((tn_eff, C), lambda b, i, j: (j, 0)),        # W1 gate half
                pl.BlockSpec((C, tn_eff), lambda b, i, j: (0, j)),        # W2
            ],
            out_specs=pl.BlockSpec((None, C, tl), lambda b, i, j: (b, 0, i)),
            scratch_shapes=[
                pltpu.VMEM((C, tl), jnp.bfloat16),   # LayerNorm output (MXU operand)
                pltpu.VMEM((C, tl), jnp.float32),    # output accumulator
            ],
        ),
        compiler_params=pltpu.CompilerParams(
            # TODO(synk): on v7x, evaluate pltpu.CORE_PARALLEL on the token
            # axes to explicitly shard tiles across the 2 TensorCores.
            dimension_semantics=("parallel", "parallel", "arbitrary"),
            vmem_limit_bytes=vmem_limit,
        ),
        cost_estimate=cost,
    )(x, gamma2, beta2, w1o, w1g, w2p)

    return out if Lp == L else out[:, :, :L]


def feedforward_swiglu(x_ncl, gamma, beta, w1, w2, tm=None, tn=None,
                       bf16_gate=False):
    """Convenience wrapper (packs weights then calls the kernel). For repeated
    calls, pack once with pack_ffn_swiglu_params and use the packed entry."""
    packed = pack_ffn_swiglu_params(gamma, beta, w1, w2, tn=tn)
    return feedforward_swiglu_packed(x_ncl, *packed, tm=tm, tn=tn,
                                     bf16_gate=bf16_gate)


def _reference(x_ncl, gamma, beta, w1, w2):
    """Pure-JAX f32 reference mirroring the PyTorch forward."""
    x = jnp.transpose(x_ncl, (0, 2, 1))                          # (B, L, C)
    mean = jnp.mean(x, axis=-1, keepdims=True)
    var = jnp.mean((x - mean) ** 2, axis=-1, keepdims=True)
    y = (x - mean) / jnp.sqrt(var + 1e-6) * gamma + beta
    h = y @ w1.T                                                 # (B, L, H)
    Hd = h.shape[-1]
    out_half, gate = h[..., : Hd // 2], h[..., Hd // 2:]
    z = out_half * (gate * jax.nn.sigmoid(gate))
    o = z @ w2.T                                                 # (B, L, C)
    return jnp.transpose(o, (0, 2, 1))                           # (B, C, L)


def _make_inputs(key, B, C, L, mult):
    H = C * mult
    H2 = H // 2
    k_x, k_g, k_b, k_w1, k_w2 = jax.random.split(key, 5)
    x = jax.random.normal(k_x, (B, C, L), dtype=jnp.float32)
    gamma = 1.0 + 0.1 * jax.random.normal(k_g, (C,), dtype=jnp.float32)
    beta = 0.1 * jax.random.normal(k_b, (C,), dtype=jnp.float32)
    w1 = jax.random.normal(k_w1, (H, C), dtype=jnp.float32) * 0.05
    w2 = jax.random.normal(k_w2, (C, H2), dtype=jnp.float32) * 0.05
    return x, gamma, beta, w1, w2


if __name__ == "__main__":
    key = jax.random.PRNGKey(0)
    k1, k2, k3 = jax.random.split(key, 3)

    # Test 1: module-default embedding_dim=32, mult=4 (H=128, H2=64), small
    # (B, C, L) input.  Resident weights, one token tile per batch element
    # (lane dim < 128 -> masked stores, fine for this tiny config).
    x, gamma, beta, w1, w2 = _make_inputs(k1, B=2, C=32, L=16, mult=4)
    out = jax.block_until_ready(feedforward_swiglu(x, gamma, beta, w1, w2))
    ref = _reference(x, gamma, beta, w1, w2)
    assert out.shape == x.shape
    assert jnp.allclose(out, ref, atol=1e-2, rtol=1e-2), "mismatch (test 1)"

    # Test 2: lane-dense C=128, L=256 using the packed-weights API (weight
    # packing hoisted out of the forward); resident-weight fast path.
    x, gamma, beta, w1, w2 = _make_inputs(k2, B=2, C=128, L=256, mult=4)
    packed = pack_ffn_swiglu_params(gamma, beta, w1, w2)
    out = jax.block_until_ready(feedforward_swiglu_packed(x, *packed))
    ref = _reference(x, gamma, beta, w1, w2)
    assert out.shape == x.shape
    assert jnp.allclose(out, ref, atol=1e-2, rtol=1e-2), "mismatch (test 2)"

    # Test 3: force the streamed-weight path (tn=128 -> 2 hidden blocks with
    # f32 accumulation) plus multi-tile token axis with L padding
    # (L=192, tm=128 -> tl=128, Lp=256, grid (2, 2, 2)).
    x, gamma, beta, w1, w2 = _make_inputs(k3, B=2, C=128, L=192, mult=4)
    packed = pack_ffn_swiglu_params(gamma, beta, w1, w2, tn=128)
    out = jax.block_until_ready(
        feedforward_swiglu_packed(x, *packed, tm=128, tn=128))
    ref = _reference(x, gamma, beta, w1, w2)
    assert out.shape == x.shape
    assert jnp.allclose(out, ref, atol=1e-2, rtol=1e-2), "mismatch (test 3)"

    print("KERNEL_OK")
</pallas_src>

<mosaic_0001>
module attributes {stable_mosaic.version = 11 : i64} {
  func.func @_ffn_swiglu_ncl_kernel(%arg0: i32, %arg1: i32, %arg2: i32, %arg3: memref<1x32x16xf32, #tpu.memory_space<vmem>>, %arg4: memref<32x1xf32, #tpu.memory_space<vmem>>, %arg5: memref<32x1xf32, #tpu.memory_space<vmem>>, %arg6: memref<64x32xbf16, #tpu.memory_space<vmem>>, %arg7: memref<64x32xbf16, #tpu.memory_space<vmem>>, %arg8: memref<32x64xbf16, #tpu.memory_space<vmem>>, %arg9: memref<1x32x16xf32, #tpu.memory_space<vmem>>, %arg10: memref<32x16xbf16, #tpu.memory_space<vmem>>, %arg11: memref<32x16xf32, #tpu.memory_space<vmem>>) attributes {dimension_semantics = [#tpu.dimension_semantics<parallel>, #tpu.dimension_semantics<parallel>, #tpu.dimension_semantics<arbitrary>], iteration_bounds = array<i64: 2, 1, 1>, scalar_prefetch = 0 : i64, scratch_operands = 2 : i64, tpu.core_type = #tpu.core_type<tc>, window_params = [{transform_indices = @transform_0, window_bounds = array<i64: 1, 32, 16>}, {pipeline_mode = #tpu.pipeline_mode<synchronous>, transform_indices = @transform_1, window_bounds = array<i64: 32, 1>}, {pipeline_mode = #tpu.pipeline_mode<synchronous>, transform_indices = @transform_2, window_bounds = array<i64: 32, 1>}, {transform_indices = @transform_3, window_bounds = array<i64: 64, 32>}, {transform_indices = @transform_4, window_bounds = array<i64: 64, 32>}, {transform_indices = @transform_5, window_bounds = array<i64: 32, 64>}, {transform_indices = @transform_6, window_bounds = array<i64: 1, 32, 16>}]} {
    %c0_i32 = arith.constant 0 : i32
    %0 = arith.cmpi eq, %arg2, %c0_i32 : i32
    %1 = arith.extui %0 : i1 to i32
    %c0_i32_0 = arith.constant 0 : i32
    %2 = arith.cmpi ne, %1, %c0_i32_0 : i32
    scf.if %2 {
      %c0_17 = arith.constant 0 : index
      %c0_18 = arith.constant 0 : index
      %c0_19 = arith.constant 0 : index
      %24 = vector.load %arg3[%c0_17, %c0_18, %c0_19] : memref<1x32x16xf32, #tpu.memory_space<vmem>>, vector<1x32x16xf32>
      %25 = vector.shape_cast %24 : vector<1x32x16xf32> to vector<32x16xf32>
      %cst_20 = arith.constant dense<0.000000e+00> : vector<16xf32>
      %26 = vector.multi_reduction <add>, %25, %cst_20 [0] : vector<32x16xf32> to vector<16xf32>
      %27 = vector.shape_cast %26 : vector<16xf32> to vector<1x16xf32>
      %cst_21 = arith.constant 3.200000e+01 : f32
      %28 = vector.broadcast %cst_21 : f32 to vector<1x16xf32>
      %29 = arith.divf %27, %28 : vector<1x16xf32>
      %30 = vector.broadcast %29 : vector<1x16xf32> to vector<32x16xf32>
      %31 = arith.subf %25, %30 : vector<32x16xf32>
      %32 = arith.mulf %31, %31 : vector<32x16xf32>
      %cst_22 = arith.constant dense<0.000000e+00> : vector<16xf32>
      %33 = vector.multi_reduction <add>, %32, %cst_22 [0] : vector<32x16xf32> to vector<16xf32>
      %34 = vector.shape_cast %33 : vector<16xf32> to vector<1x16xf32>
      %cst_23 = arith.constant 3.200000e+01 : f32
      %35 = vector.broadcast %cst_23 : f32 to vector<1x16xf32>
      %36 = arith.divf %34, %35 : vector<1x16xf32>
      %cst_24 = arith.constant 9.99999997E-7 : f32
      %37 = vector.broadcast %cst_24 : f32 to vector<1x16xf32>
      %38 = arith.addf %36, %37 : vector<1x16xf32>
      %39 = math.rsqrt %38 : vector<1x16xf32>
      %40 = vector.broadcast %39 : vector<1x16xf32> to vector<32x16xf32>
      %41 = arith.mulf %31, %40 : vector<32x16xf32>
      %c0_25 = arith.constant 0 : index
      %c0_26 = arith.constant 0 : index
      %42 = vector.load %arg4[%c0_25, %c0_26] : memref<32x1xf32, #tpu.memory_space<vmem>>, vector<32x1xf32>
      %43 = vector.broadcast %42 : vector<32x1xf32> to vector<32x16xf32>
      %44 = arith.mulf %41, %43 : vector<32x16xf32>
      %c0_27 = arith.constant 0 : index
      %c0_28 = arith.constant 0 : index
      %45 = vector.load %arg5[%c0_27, %c0_28] : memref<32x1xf32, #tpu.memory_space<vmem>>, vector<32x1xf32>
      %46 = vector.broadcast %45 : vector<32x1xf32> to vector<32x16xf32>
      %47 = arith.addf %44, %46 : vector<32x16xf32>
      %48 = arith.truncf %47 : vector<32x16xf32> to vector<32x16xbf16>
      %c0_29 = arith.constant 0 : index
      %c0_30 = arith.constant 0 : index
      %49 = vector.load %arg10[%c0_29, %c0_30] : memref<32x16xbf16, #tpu.memory_space<vmem>>, vector<32x16xbf16>
      tpu.vector_store %arg10[%c0_29, %c0_30], %48 {strides = array<i32>} : memref<32x16xbf16, #tpu.memory_space<vmem>>, vector<32x16xbf16>,
      %cst_31 = arith.constant 0.000000e+00 : f32
      %50 = vector.broadcast %cst_31 : f32 to vector<32x16xf32>
      %c0_32 = arith.constant 0 : index
      %c0_33 = arith.constant 0 : index
      %51 = vector.load %arg11[%c0_32, %c0_33] : memref<32x16xf32, #tpu.memory_space<vmem>>, vector<32x16xf32>
      tpu.vector_store %arg11[%c0_32, %c0_33], %50 {strides = array<i32>} : memref<32x16xf32, #tpu.memory_space<vmem>>, vector<32x16xf32>,
    } else {
    }
    %c0 = arith.constant 0 : index
    %c0_1 = arith.constant 0 : index
    %3 = vector.load %arg10[%c0, %c0_1] : memref<32x16xbf16, #tpu.memory_space<vmem>>, vector<32x16xbf16>
    %c0_2 = arith.constant 0 : index
    %c0_3 = arith.constant 0 : index
    %4 = vector.load %arg6[%c0_2, %c0_3] : memref<64x32xbf16, #tpu.memory_space<vmem>>, vector<64x32xbf16>
    %cst = arith.constant dense<0.000000e+00> : vector<64x16xf32>
    %5 = tpu.matmul %4, %3, %cst {dimension_numbers = #tpu.dot_dimension_numbers<[1], [0], [0], [1], [0, 0, 1, 1], [], []>} : vector<64x32xbf16>, vector<32x16xbf16>, vector<64x16xf32> -> vector<64x16xf32>
    %c0_4 = arith.constant 0 : index
    %c0_5 = arith.constant 0 : index
    %6 = vector.load %arg7[%c0_4, %c0_5] : memref<64x32xbf16, #tpu.memory_space<vmem>>, vector<64x32xbf16>
    %cst_6 = arith.constant dense<0.000000e+00> : vector<64x16xf32>
    %7 = tpu.matmul %6, %3, %cst_6 {dimension_numbers = #tpu.dot_dimension_numbers<[1], [0], [0], [1], [0, 0, 1, 1], [], []>} : vector<64x32xbf16>, vector<32x16xbf16>, vector<64x16xf32> -> vector<64x16xf32>
    %8 = arith.negf %7 : vector<64x16xf32>
    %9 = math.exp %8 : vector<64x16xf32>
    %cst_7 = arith.constant 1.000000e+00 : f32
    %10 = vector.broadcast %cst_7 : f32 to vector<64x16xf32>
    %11 = arith.addf %10, %9 : vector<64x16xf32>
    %12 = arith.divf %10, %11 : vector<64x16xf32>
    %13 = arith.mulf %7, %12 : vector<64x16xf32>
    %14 = arith.mulf %5, %13 : vector<64x16xf32>
    %15 = arith.truncf %14 : vector<64x16xf32> to vector<64x16xbf16>
    %c0_8 = arith.constant 0 : index
    %c0_9 = arith.constant 0 : index
    %16 = vector.load %arg11[%c0_8, %c0_9] : memref<32x16xf32, #tpu.memory_space<vmem>>, vector<32x16xf32>
    %c0_10 = arith.constant 0 : index
    %c0_11 = arith.constant 0 : index
    %17 = vector.load %arg8[%c0_10, %c0_11] : memref<32x64xbf16, #tpu.memory_space<vmem>>, vector<32x64xbf16>
    %cst_12 = arith.constant dense<0.000000e+00> : vector<32x16xf32>
    %18 = tpu.matmul %17, %15, %cst_12 {dimension_numbers = #tpu.dot_dimension_numbers<[1], [0], [0], [1], [0, 0, 1, 1], [], []>} : vector<32x64xbf16>, vector<64x16xbf16>, vector<32x16xf32> -> vector<32x16xf32>
    %19 = arith.addf %16, %18 : vector<32x16xf32>
    %c0_13 = arith.constant 0 : index
    %c0_14 = arith.constant 0 : index
    %20 = vector.load %arg11[%c0_13, %c0_14] : memref<32x16xf32, #tpu.memory_space<vmem>>, vector<32x16xf32>
    tpu.vector_store %arg11[%c0_13, %c0_14], %19 {strides = array<i32>} : memref<32x16xf32, #tpu.memory_space<vmem>>, vector<32x16xf32>,
    %c0_i32_15 = arith.constant 0 : i32
    %21 = arith.cmpi eq, %arg2, %c0_i32_15 : i32
    %22 = arith.extui %21 : i1 to i32
    %c0_i32_16 = arith.constant 0 : i32
    %23 = arith.cmpi ne, %22, %c0_i32_16 : i32
    scf.if %23 {
      %c0_17 = arith.constant 0 : index
      %c0_18 = arith.constant 0 : index
      %24 = vector.load %arg11[%c0_17, %c0_18] : memref<32x16xf32, #tpu.memory_space<vmem>>, vector<32x16xf32>
      %c0_19 = arith.constant 0 : index
      %c0_20 = arith.constant 0 : index
      %c0_21 = arith.constant 0 : index
      %25 = vector.load %arg9[%c0_19, %c0_20, %c0_21] : memref<1x32x16xf32, #tpu.memory_space<vmem>>, vector<1x32x16xf32>
      %26 = vector.shape_cast %25 : vector<1x32x16xf32> to vector<32x16xf32>
      %27 = vector.shape_cast %24 : vector<32x16xf32> to vector<1x32x16xf32>
      tpu.vector_store %arg9[%c0_19, %c0_20, %c0_21], %27 {strides = array<i32>} : memref<1x32x16xf32, #tpu.memory_space<vmem>>, vector<1x32x16xf32>,
    } else {
    }
    return
  }
  func.func @transform_0(%arg0: i32, %arg1: i32, %arg2: i32) -> (i32, i32, i32) {
    %c0_i32 = arith.constant 0 : i32
    %c0_i32_0 = arith.constant 0 : i32
    return %arg0, %c0_i32, %arg1 : i32, i32, i32
  }
  func.func @transform_1(%arg0: i32, %arg1: i32, %arg2: i32) -> (i32, i32) {
    %c0_i32 = arith.constant 0 : i32
    %c0_i32_0 = arith.constant 0 : i32
    %c0_i32_1 = arith.constant 0 : i32
    return %c0_i32, %c0_i32_0 : i32, i32
  }
  func.func @transform_2(%arg0: i32, %arg1: i32, %arg2: i32) -> (i32, i32) {
    %c0_i32 = arith.constant 0 : i32
    %c0_i32_0 = arith.constant 0 : i32
    %c0_i32_1 = arith.constant 0 : i32
    return %c0_i32, %c0_i32_0 : i32, i32
  }
  func.func @transform_3(%arg0: i32, %arg1: i32, %arg2: i32) -> (i32, i32) {
    %c0_i32 = arith.constant 0 : i32
    %c0_i32_0 = arith.constant 0 : i32
    return %arg2, %c0_i32 : i32, i32
  }
  func.func @transform_4(%arg0: i32, %arg1: i32, %arg2: i32) -> (i32, i32) {
    %c0_i32 = arith.constant 0 : i32
    %c0_i32_0 = arith.constant 0 : i32
    return %arg2, %c0_i32 : i32, i32
  }
  func.func @transform_5(%arg0: i32, %arg1: i32, %arg2: i32) -> (i32, i32) {
    %c0_i32 = arith.constant 0 : i32
    %c0_i32_0 = arith.constant 0 : i32
    return %c0_i32, %arg2 : i32, i32
  }
  func.func @transform_6(%arg0: i32, %arg1: i32, %arg2: i32) -> (i32, i32, i32) {
    %c0_i32 = arith.constant 0 : i32
    %c0_i32_0 = arith.constant 0 : i32
    return %arg0, %c0_i32, %arg1 : i32, i32, i32
  }
}

</mosaic_0001>

<bundles_post_ra>
// kernel: feedforward_swiglu_packed.1
= control target key start
LH: loop header
LB: loop body
LE: loop exit
PB: predicated region body
PF: predicated region fallthrough
CT: control target
= control target key end

     0   :  { %s1249_s21 = smov 0   ;;  %s1251_s22 = smov 0   ;;  %s1389_s0 = inlined_call_operand.vmem [shape: f32[2,32,16], index: 0, kind: input, shape index: {}]   ;;  %s1390_s1 = inlined_call_operand.vmem [shape: f32[32,1], index: 1, kind: input, shape index: {}]   ;;  %s1391_s2 = inlined_call_operand.vmem [shape: f32[32,1], index: 2, kind: input, shape index: {}]   ;;  %s1392_s3 = inlined_call_operand.vmem [shape: bf16[64,32], index: 3, kind: input, shape index: {}]   ;;  %s1393_s4 = inlined_call_operand.vmem [shape: bf16[64,32], index: 4, kind: input, shape index: {}]   ;;  %s1394_s5 = inlined_call_operand.vmem [shape: bf16[32,64], index: 5, kind: input, shape index: {}]   ;;  %s1395_s6 = inlined_call_operand.vmem [shape: f32[2,32,16], index: 6, kind: output, shape index: {}]  }
   0x1   :  { %s1253_s23 = smov 0  }
   0x2 LB: > { %s35_s24 = sadd.s32 1, %s1206_s22  ;;  %p1013_p0 = scmp.ge.s32.totalorder %s1210_s23, 1  ;;  %s1210_s23 = sphi %s1253_s23, %s16_s23   ;;  %s1206_s22 = sphi %s1251_s22, %s1397_s22   ;;  %s1202_s21 = sphi %s1249_s21, %s1396_s21  }
   0x3   : > { %p37_p1 = scmp.ge.s32.totalorder %s35_s24, 2  ;;  %p269_p2 = scmp.lt.s32.totalorder %s1210_s23, 3 }
   0x5   : > { %s1399_s24 = smov (%p37_p1, %s35_s24), 0  ;;  %p270_p3 = pnand %p1013_p0, %p269_p2 }
   0x6   : > { %p319_p4 = scmp.lt.s32.totalorder (!%p270_p3), %s1202_s21, 1 }
   0x7   : > { %273 = sbr.rel (%p270_p3) target bundleno = 635 (0x27b), region = 44 }
   0xc   : > { %v434_v0 = vld [vmem:[%s1391_s2 + $0x10] sm:$0xff]  ;;  %v1212_v2 = vmov 0   ;;  %v435_v3 = vld [vmem:[%s1391_s2 + $0x18] sm:$0xff]  ;;  %s1401_s21 = smov (!%p319_p4, %s1202_s21), 1  ;;  %vm360_vm0 = vcmask 130048   ;;  %v405_v5 = vld [vmem:[%s1390_s1 + $0x8] sm:$0xff] }
   0xd   : > { %v406_v1 = vld [vmem:[%s1390_s1 + $0x10] sm:$0xff]  ;;  %1141 = vset.pattern.permute.xlu1 %v1212_v2  ;;  %1140 = vset.pattern.permute.xlu0 %v1212_v2  ;;  %v407_v4 = vld [vmem:[%s1390_s1 + $0x18] sm:$0xff]  ;;  %s1054_s9 = sshll.u32 %s1401_s21, 5  ;;  %v404_v8 = vld [vmem:[%s1390_s1] sm:$0xff]  ;;  %vm529_vm1 = vcmask 261120   ;;  %vm476_vm2 = vcmask 125952  }
   0xe   : > { %448 = vperm.xlu1 %1141, %v434_v0   ;;  %420 = vperm.xlu0 %1140, %v406_v1   ;;  %s326_s12 = scalar_lea.vmem %s1389_s0, %s1054_s9  ;;  %v433_v12 = vld [vmem:[%s1391_s2 + $0x8] sm:$0xff]  ;;  %v432_v13 = vld [vmem:[%s1391_s2] sm:$0xff]  ;;  %vm798_vm3 = vcmask 523264   ;;  %s350_s28 = scalar_lea.vmem %s1395_s6, %s1054_s9 }
   0xf   : > { %v356_v6 = vld [vmem:[%s326_s12] sm:$0xff]  ;;  %v357_v7 = vld [vmem:[%s326_s12 + $0x8] sm:$0xff]  ;;  %v358_v9 = vld [vmem:[%s326_s12 + $0x10] sm:$0xff] }
  0x10   : > { %v361_v10 = vsel %vm360_vm0, %v356_v6, 0.0  ;;  %v362_v11 = vsel %vm360_vm0, %v357_v7, 0.0  ;;  %v364_v15 = vsel %vm360_vm0, %v358_v9, 0.0  ;;  %v359_v16 = vld [vmem:[%s326_s12 + $0x18] sm:$0xff]  ;;  %v1144_v21 = vld [vmem:[%s1393_s4] sm:$0xff]  }
  0x11   : > { %v363_v14 = vadd.f32 %v362_v11, %v361_v10  ;;  %v366_v18 = vsel %vm360_vm0, %v359_v16, 0.0  ;;  %1094 = vmatprep.mubr.msk.bf16.mxu1 %vm529_vm1, %v1144_v21  ;;  %v1148_v25 = vld [vmem:[%s1392_s3] sm:$0xff]  }
  0x12   : > { %453 = vperm.xlu1 %1141, %v435_v3   ;;  %425 = vperm.xlu0 %1140, %v407_v4   ;;  %v1152_v21 = vld [vmem:[%s1394_s5] sm:$0xff]  }
  0x13   : > { %v365_v17 = vadd.f32 %v364_v15, %v363_v14  ;;  %1082 = vmatprep.mubr.msk.bf16.mxu0 %vm529_vm1, %v1148_v25  ;;  %v1145_v15 = vld [vmem:[%s1393_s4 + $0x8] sm:$0xff]  }
  0x15   : > { %v367_v19 = vadd.f32 %v366_v18, %v365_v17  ;;  %v1146_v17 = vld [vmem:[%s1393_s4 + $0x10] sm:$0xff]  }
  0x16   : > { %415 = vperm.xlu1 %1141, %v405_v5   ;;  %410 = vperm.xlu0 %1140, %v404_v8   ;;  %v1150_v18 = vld [vmem:[%s1392_s3 + $0x10] sm:$0xff]  }
  0x17   : > { %v368_v20 = vrot.slane %v367_v19, 4 }
  0x19   : > { %v369_v22 = vadd.f32 %v368_v20, %v367_v19  ;;  %v1147_v19 = vld [vmem:[%s1393_s4 + $0x18] sm:$0xff]  }
  0x1a   : > { %443 = vperm.xlu1 %1141, %v433_v12   ;;  %438 = vperm.xlu0 %1140, %v432_v13   ;;  %v1151_v20 = vld [vmem:[%s1392_s3 + $0x18] sm:$0xff]  }
  0x1b   : > { %v370_v23 = vrot.slane %v369_v22, 2 }
  0x1d   : > { %v371_v24 = vadd.f32 %v370_v23, %v369_v22  ;;  %v1213_v22 = vmov 0.0  }
  0x1e   : > { %483 = vst.msk [vmem:[#allocation3 + $0x10] sm:$0xff] %vm360_vm0, %v1213_v22  ;;  %481 = vst.msk [vmem:[#allocation3] sm:$0xff] %vm360_vm0, %v1213_v22 }
  0x1f   : > { %v372_v26 = vrot.slane %v371_v24, 1  ;;  %482 = vst.msk [vmem:[#allocation3 + $0x8] sm:$0xff] %vm360_vm0, %v1213_v22  ;;  %484 = vst.msk [vmem:[#allocation3 + $0x18] sm:$0xff] %vm360_vm0, %v1213_v22 }
  0x21   : > { %v373_v27 = vadd.f32 %v372_v26, %v371_v24 }
  0x23   : > { %v375_v28 = vmul.f32 0.03125, %v373_v27 }
  0x25   : > { %v376_v29 = vsub.f32 %v356_v6, %v375_v28  ;;  %v377_v30 = vsub.f32 %v357_v7, %v375_v28  ;;  %v378_v31 = vsub.f32 %v358_v9, %v375_v28  ;;  %v379_v34 = vsub.f32 %v359_v16, %v375_v28  ;;  %v1149_v16 = vld [vmem:[%s1392_s3 + $0x8] sm:$0xff]  }
  0x27   : > { %v380_v32 = vmul.f32 %v376_v29, %v376_v29  ;;  %v381_v33 = vmul.f32 %v377_v30, %v377_v30  ;;  %v382_v35 = vmul.f32 %v378_v31, %v378_v31  ;;  %v383_v39 = vmul.f32 %v379_v34, %v379_v34 }
  0x29   : > { %v384_v36 = vsel %vm360_vm0, %v380_v32, 0.0  ;;  %v385_v37 = vsel %vm360_vm0, %v381_v33, 0.0  ;;  %v387_v40 = vsel %vm360_vm0, %v382_v35, 0.0  ;;  %v389_v42 = vsel %vm360_vm0, %v383_v39, 0.0 }
  0x2a   : > { %v386_v38 = vadd.f32 %v385_v37, %v384_v36 }
  0x2c   : > { %v388_v41 = vadd.f32 %v387_v40, %v386_v38 }
  0x2e   : > { %v390_v43 = vadd.f32 %v389_v42, %v388_v41 }
  0x30   : > { %v391_v44 = vrot.slane %v390_v43, 4 }
  0x32   : > { %v392_v45 = vadd.f32 %v391_v44, %v390_v43 }
  0x34   : > { %v393_v46 = vrot.slane %v392_v45, 2 }
  0x36   : > { %v394_v47 = vadd.f32 %v393_v46, %v392_v45 }
  0x38   : > { %v395_v48 = vrot.slane %v394_v47, 1 }
  0x3a   : > { %v396_v49 = vadd.f32 %v395_v48, %v394_v47 }
  0x3c   : > { %v397_v50 = vmul.f32 0.03125, %v396_v49 }
  0x3e   : > { %v398_v51 = vadd.f32 1e-06, %v397_v50 }
  0x40   : > { %1154 = vrsqrt.f32 %v398_v51 }
  0x4d   : > { %v1155_v52 = vpop.eup %1154 }
  0x4e   : > { %v402_v53 = vmul.f32 %v1155_v52, %v378_v31  ;;  %v403_v57 = vmul.f32 %v1155_v52, %v379_v34  ;;  %v401_v0 = vmul.f32 %v1155_v52, %v377_v30  ;;  %v400_v1 = vmul.f32 %v1155_v52, %v376_v29 }
  0x89   : > { %v449_v54 = vpop.permute.xlu1 %448  ;;  %v421_v55 = vpop.permute.xlu0 %420 }
  0x8a   : > { %v430_v56 = vmul.f32 %v421_v55, %v402_v53 }
  0x8c   : > { %v458_v58 = vadd.f32 %v449_v54, %v430_v56 }
  0x8d   : > { %v454_v59 = vpop.permute.xlu1 %453  ;;  %v426_v60 = vpop.permute.xlu0 %425 }
  0x8e   : > { %v1058_v61 = vpack.c.bf16 %v458_v58, %v458_v58  ;;  %v431_v62 = vmul.f32 %v426_v60, %v403_v57 }
  0x90   : > { %479 = vst.msk [vmem:[#allocation2 + $0x8] sm:$0xf] %vm476_vm2, %v1058_v61  ;;  %v459_v63 = vadd.f32 %v454_v59, %v431_v62 }
  0x91   : > { %v416_v2 = vpop.permute.xlu1 %415  ;;  %v411_v3 = vpop.permute.xlu0 %410 }
  0x92   : > { %v1059_v4 = vpack.c.bf16 %v459_v63, %v459_v63  ;;  %v429_v5 = vmul.f32 %v416_v2, %v401_v0  ;;  %v428_v6 = vmul.f32 %v411_v3, %v400_v1 }
  0x94   : > { %480 = vst.msk [vmem:[#allocation2 + $0xc] sm:$0xf] %vm476_vm2, %v1059_v4 }
  0x95   : > { %v444_v7 = vpop.permute.xlu1 %443  ;;  %v439_v8 = vpop.permute.xlu0 %438 }
  0x96   : > { %v457_v9 = vadd.f32 %v444_v7, %v429_v5  ;;  %v456_v10 = vadd.f32 %v439_v8, %v428_v6 }
  0x98   : > { %v1057_v11 = vpack.c.bf16 %v457_v9, %v457_v9  ;;  %v1056_v12 = vpack.c.bf16 %v456_v10, %v456_v10 }
  0x9a   : > { %478 = vst.msk [vmem:[#allocation2 + $0x4] sm:$0xf] %vm476_vm2, %v1057_v11  ;;  %477 = vst.msk [vmem:[#allocation2] sm:$0xf] %vm476_vm2, %v1056_v12 }
  0x9b   : > { %v1142_v13 = vld [vmem:[#allocation2 + $0x8] sm:$0xff]  }
  0x9c   : > { %1078 = vmatprep.subr.bf16.mxu0 %v1142_v13  ;;  %1090 = vmatprep.subr.bf16.mxu1 %v1142_v13 }
  0x9d   : > { %1079 = vmatpush3.bf16.msra.mxu0 %v1142_v13  ;;  %1091 = vmatpush3.bf16.msra.mxu1 %v1142_v13 }
  0xa1   : > { %v1143_v14 = vld [vmem:[#allocation2] sm:$0xff]  }
  0xa2   : > { %1080 = vmatprep.subr.bf16.mxu0 %v1143_v14  ;;  %1092 = vmatprep.subr.bf16.mxu1 %v1143_v14 }
  0xa3   : > { %1081 = vmatpush3.bf16.msra.mxu0 %v1143_v14  ;;  %1093 = vmatpush3.bf16.msra.mxu1 %v1143_v14 }
  0xa6   : > { %1095 = vmatmul.mubr.msk.bf16.vlgmr.msra.gmra.mxu1 %vm529_vm1, %v1145_v15  ;;  %1083 = vmatmul.mubr.msk.bf16.vlgmr.msra.gmra.mxu0 %vm529_vm1, %v1149_v16 }
  0xa7   : > { %1098 = vmatprep.mubr.msk.bf16.mxu1 %vm529_vm1, %v1146_v17  ;;  %1086 = vmatprep.mubr.msk.bf16.mxu0 %vm529_vm1, %v1150_v18 }
  0xae   : > { %1099 = vmatmul.mubr.msk.bf16.gmra.mxu1 %vm529_vm1, %v1147_v19  ;;  %1087 = vmatmul.mubr.msk.bf16.gmra.mxu0 %vm529_vm1, %v1151_v20 }
  0xaf   : > { %1110 = vmatprep.mubr.msk.bf16.mxu0 %vm798_vm3, %v1152_v21 }
 0x166   : > { %v1351_v23 = vpop.f32.mrf.mxu1  ;;  %v1084_v39 = vpop.f32.mrf.mxu0 }
 0x167   : > { %v1042_v28 = vmul.f32 -1.442695, %v1351_v23 }
 0x168   : > { %v1353_v24 = vpop.f32.mrf.mxu1  ;;  %v576_v42 = vpop.f32.mrf.mxu0 }
 0x169   : > { %v1040_v34 = vmul.f32 -1.442695, %v1353_v24 }
 0x16a   : > { %v1097_v25 = vpop.f32.mrf.mxu1  ;;  %v1085_v51 = vpop.f32.mrf.mxu0 }
 0x16b   : > { %v1043_v26 = vmul.f32 -1.442695, %v1097_v25 }
 0x16c   : > { %v1355_v27 = vpop.f32.mrf.mxu1  ;;  %v579_v57 = vpop.f32.mrf.mxu0 }
 0x16d   : > { %1156 = vpow2.f32 %v1043_v26  ;;  %v1041_v31 = vmul.f32 -1.442695, %v1355_v27 }
 0x16e   : > { %v1100_v29 = vpop.f32.mrf.mxu1  ;;  %v1088_v59 = vpop.f32.mrf.mxu0 }
 0x16f   : > { %v1046_v30 = vmul.f32 -1.442695, %v1100_v29 }
 0x170   : > { %v697_v32 = vpop.f32.mrf.mxu1  ;;  %v592_v61 = vpop.f32.mrf.mxu0 }
 0x171   : > { %1158 = vpow2.f32 %v1046_v30  ;;  %v1044_v33 = vmul.f32 -1.442695, %v697_v32  ;;  %v780_v30 = vld [vmem:[#allocation3] sm:$0xff] }
 0x172   : > { %1160 = vpow2.f32 %v1042_v28  ;;  %v1101_v35 = vpop.f32.mrf.mxu1  ;;  %v1089_v2 = vpop.f32.mrf.mxu0 }
 0x173   : > { %1162 = vpow2.f32 %v1044_v33  ;;  %v1047_v36 = vmul.f32 -1.442695, %v1101_v35  ;;  %v783_v33 = vld [vmem:[#allocation3 + $0x18] sm:$0xff] }
 0x174   : > { %1164 = vpow2.f32 %v1041_v31  ;;  %v700_v37 = vpop.f32.mrf.mxu1  ;;  %v595_v12 = vpop.f32.mrf.mxu0 }
 0x175   : > { %1166 = vpow2.f32 %v1047_v36  ;;  %v1045_v38 = vmul.f32 -1.442695, %v700_v37  ;;  %v781_v36 = vld [vmem:[#allocation3 + $0x8] sm:$0xff] }
 0x176   : > { %1168 = vpow2.f32 %v1040_v34 }
 0x177   : > { %1170 = vpow2.f32 %v1045_v38 }
 0x17a   : > { %v1157_v40 = vpop.eup %1156 }
 0x17b   : > { %v739_v46 = vadd.f32 1.0, %v1157_v40 }
 0x17e   : > { %v1159_v41 = vpop.eup %1158 }
 0x17f   : > { %v1161_v43 = vpop.eup %1160  ;;  %v742_v44 = vadd.f32 1.0, %v1159_v41 }
 0x180   : > { %v1163_v45 = vpop.eup %1162  ;;  %v738_v50 = vadd.f32 1.0, %v1161_v43 }
 0x181   : > { %v1165_v47 = vpop.eup %1164  ;;  %1172 = vrcp.f32 %v742_v44  ;;  %v740_v48 = vadd.f32 1.0, %v1163_v45 }
 0x182   : > { %v1167_v49 = vpop.eup %1166  ;;  %v737_v55 = vadd.f32 1.0, %v1165_v47 }
 0x183   : > { %v1169_v52 = vpop.eup %1168  ;;  %1174 = vrcp.f32 %v740_v48  ;;  %v743_v53 = vadd.f32 1.0, %v1167_v49 }
 0x184   : > { %v1171_v54 = vpop.eup %1170  ;;  %1176 = vrcp.f32 %v739_v46  ;;  %v736_v58 = vadd.f32 1.0, %v1169_v52 }
 0x185   : > { %1178 = vrcp.f32 %v743_v53  ;;  %v741_v56 = vadd.f32 1.0, %v1171_v54 }
 0x186   : > { %1180 = vrcp.f32 %v738_v50 }
 0x187   : > { %1182 = vrcp.f32 %v741_v56 }
 0x188   : > { %1184 = vrcp.f32 %v737_v55 }
 0x189   : > { %1186 = vrcp.f32 %v736_v58 }
 0x18e   : > { %v1173_v60 = vpop.eup %1172 }
 0x18f   : > { %v766_v0 = vmul.f32 %v1173_v60, %v1100_v29  ;;  %v782_v29 = vld [vmem:[#allocation3 + $0x10] sm:$0xff] }
 0x190   : > { %v1175_v62 = vpop.eup %1174 }
 0x191   : > { %v1177_v63 = vpop.eup %1176  ;;  %v764_v4 = vmul.f32 %v1175_v62, %v697_v32  ;;  %v774_v9 = vmul.f32 %v1088_v59, %v766_v0 }
 0x192   : > { %v1179_v1 = vpop.eup %1178  ;;  %v763_v7 = vmul.f32 %v1177_v63, %v1097_v25 }
 0x193   : > { %v1181_v3 = vpop.eup %1180  ;;  %v767_v5 = vmul.f32 %v1179_v1, %v1101_v35  ;;  %v772_v14 = vmul.f32 %v764_v4, %v592_v61 }
 0x194   : > { %v1183_v6 = vpop.eup %1182  ;;  %v762_v13 = vmul.f32 %v1181_v3, %v1351_v23  ;;  %v771_v19 = vmul.f32 %v1085_v51, %v763_v7 }
 0x195   : > { %v765_v8 = vmul.f32 %v1183_v6, %v700_v37  ;;  %v775_v10 = vmul.f32 %v1089_v2, %v767_v5  ;;  %v1185_v11 = vpop.eup %1184 }
 0x196   : > { %v1187_v17 = vpop.eup %1186  ;;  %v761_v18 = vmul.f32 %v1185_v11, %v1355_v27  ;;  %v770_v22 = vmul.f32 %v1084_v39, %v762_v13  ;;  %v1153_v27 = vld [vmem:[%s1394_s5 + $0x8] sm:$0xff]  }
 0x197   : > { %v779_v15 = vpack.c.bf16 %v775_v10, %v774_v9  ;;  %v773_v16 = vmul.f32 %v765_v8, %v595_v12  ;;  %v760_v21 = vmul.f32 %v1187_v17, %v1353_v24 }
 0x198   : > { %v777_v25 = vpack.c.bf16 %v771_v19, %v770_v22  ;;  %v769_v26 = vmul.f32 %v761_v18, %v579_v57 }
 0x199   : > { %v778_v20 = vpack.c.bf16 %v773_v16, %v772_v14  ;;  %1102 = vmatprep.subr.bf16.mxu0 %v779_v15  ;;  %v768_v28 = vmul.f32 %v760_v21, %v576_v42 }
 0x19a   : > { %1103 = vmatpush3.bf16.msra.mxu0 %v779_v15 }
 0x19b   : > { %1104 = vmatprep.subr.bf16.mxu0 %v778_v20  ;;  %v776_v23 = vpack.c.bf16 %v769_v26, %v768_v28 }
 0x19e   : > { %1105 = vmatpush3.bf16.msra.mxu0 %v778_v20 }
 0x19f   : > { %1106 = vmatprep.subr.bf16.mxu0 %v777_v25 }
 0x1a2   : > { %1107 = vmatpush3.bf16.msra.mxu0 %v777_v25 }
 0x1a3   : > { %1108 = vmatprep.subr.bf16.mxu0 %v776_v23 }
 0x1a6   : > { %1109 = vmatpush3.bf16.msra.mxu0 %v776_v23 }
 0x1a9   : > { %1111 = vmatmul.mubr.msk.bf16.vlgmr.msra.gmra.mxu0 %vm798_vm3, %v1153_v27 }
 0x269   : > { %v1112_v24 = vpop.f32.mrf.mxu0 }
 0x26a   : > { %v856_v31 = vadd.f32 %v1112_v24, %v782_v29 }
 0x26b   : > { %v839_v32 = vpop.f32.mrf.mxu0 }
 0x26c   : > { %861 = vst.msk [vmem:[#allocation3 + $0x10] sm:$0xff] %vm360_vm0, %v856_v31  ;;  %v854_v34 = vadd.f32 %v839_v32, %v780_v30 }
 0x26d   : > { %v1113_v35 = vpop.f32.mrf.mxu0 }
 0x26e   : > { %859 = vst.msk [vmem:[#allocation3] sm:$0xff] %vm360_vm0, %v854_v34  ;;  %v857_v37 = vadd.f32 %v1113_v35, %v783_v33 }
 0x26f   : > { %v842_v38 = vpop.f32.mrf.mxu0 }
 0x270   : > { %862 = vst.msk [vmem:[#allocation3 + $0x18] sm:$0xff] %vm360_vm0, %v857_v37  ;;  %v855_v39 = vadd.f32 %v842_v38, %v781_v36 }
 0x272   : > { %860 = vst.msk [vmem:[#allocation3 + $0x8] sm:$0xff] %vm360_vm0, %v855_v39 }
 0x273   : > { %v868_v40 = vld [vmem:[#allocation3 + $0x10] sm:$0xff] }
 0x274   : > { %872 = vst.msk [vmem:[%s350_s28 + $0x10] sm:$0xff] %vm360_vm0, %v868_v40 }
 0x275   : > { %v866_v41 = vld [vmem:[#allocation3] sm:$0xff] }
 0x276   : > { %870 = vst.msk [vmem:[%s350_s28] sm:$0xff] %vm360_vm0, %v866_v41 }
 0x277   : > { %v869_v42 = vld [vmem:[#allocation3 + $0x18] sm:$0xff] }
 0x278   : > { %873 = vst.msk [vmem:[%s350_s28 + $0x18] sm:$0xff] %vm360_vm0, %v869_v42 }
 0x279   : > { %v867_v43 = vld [vmem:[#allocation3 + $0x8] sm:$0xff] }
 0x27a   : > { %871 = vst.msk [vmem:[%s350_s28 + $0x8] sm:$0xff] %vm360_vm0, %v867_v43 }
 0x27b PF: > { %s16_s23 = sadd.s32 1, %s1210_s23   ;;  %s1396_s21 = smov %s1206_s22 }
 0x27c   : > { %p13_p5 = scmp.ge.s32.totalorder %s16_s23, 4   ;;  %s1397_s22 = smov %s1399_s24 }
 0x27e   :  { %15 = sbr.rel (!%p13_p5) target bundleno = 2 (0x2), region = 91 }

</bundles_post_ra>
